<compile_context>
chip_gen: v7x
topology: tpu7x:2x2x1
jax: 0.10.0
libtpu: 0.0.40
codegen_flags: <defaults>
</compile_context>

<pallas_src>
import functools

import jax
import jax.numpy as jnp
from jax import lax
from jax.experimental import pallas as pl
from jax.experimental.pallas import tpu as pltpu

ALPHA = 0.01     # LeakyReLU negative slope
EPS = 1e-5       # BatchNorm eps (PyTorch default)

# Model hyper-params (consistent with the module's constructor)
INPUT_DIM = 4
FIRST_DIM = 8
BLOCK_NUM = 2
N_BATCH = 2
SEQ_LEN = 64                              # M = N*L = 128 -> lane-dense output
C_MAX = FIRST_DIM * (2 ** BLOCK_NUM)      # 32: widest channel count, pad target


def m2lp_kernel(x_ref, w_ref, g_ref, o_ref, *, n_bn):
    """Fused M2LP forward, channels-on-sublanes / tokens-on-lanes layout.

    x_ref : (C_MAX, M)                VMEM  input, channels zero-padded, matmul dtype
    w_ref : (n_bn+1, C_MAX, C_MAX)    VMEM  1x1-conv weights stored (Cout, Cin),
                                            zero-padded; block n_bn row 0 = reg weight
    g_ref : (C_MAX, 2*n_bn+1)         VMEM  f32 columns: [0:n_bn)=gamma,
                                            [n_bn:2n_bn)=beta, [0, 2n_bn]=reg bias
    o_ref : (1, M)                    VMEM  lane-dense output row (f32)
    """
    mm_dt = w_ref.dtype
    h = x_ref[...]                                            # (C_MAX, M) mm_dt
    for i in range(n_bn):
        # 1x1 conv == matmul; conv bias omitted (train-mode BN cancels it).
        y = jnp.dot(w_ref[i], h, preferred_element_type=jnp.float32)  # (C, M) f32
        # Fused training-mode BatchNorm, two-pass (stable) variance; lane reductions.
        mu = jnp.mean(y, axis=-1, keepdims=True)              # (C, 1)
        d = y - mu
        var = jnp.mean(d * d, axis=-1, keepdims=True)         # biased variance
        s = g_ref[:, i:i + 1] * lax.rsqrt(var + EPS)          # gamma / sigma (EUP)
        z = d * s + g_ref[:, n_bn + i:n_bn + i + 1]           # scale + shift
        h = jnp.maximum(z, ALPHA * z).astype(mm_dt)           # LeakyReLU (f32) -> mm_dt
    # reg_layer: plain NN matmul, lane-dense (1, M) output.
    w_reg = w_ref[n_bn][0:1, :]                               # (1, C_MAX)
    out = jnp.dot(w_reg, h, preferred_element_type=jnp.float32)   # (1, M) f32
    o_ref[...] = out + g_ref[0:1, 2 * n_bn:2 * n_bn + 1]      # + reg bias


def layer_dims(input_dim, first_dim, block_num):
    """(Cin, Cout) pairs of the conv+BN+LeakyReLU layers, mirroring __init__."""
    dims = [(input_dim, first_dim)]           # prep_layer
    temp = first_dim
    for block_id in range(block_num):
        dims.append((temp, temp))             # Conv{block_id}
        if block_id != block_num - 1:
            dims.append((temp, temp * 2))     # Conv{block_id}_exp
            temp *= 2
    dims.append((temp, temp * 2))             # Conv_post
    return dims, temp * 2


def init_params(key, input_dim=INPUT_DIM, first_dim=FIRST_DIM, block_num=BLOCK_NUM):
    """PyTorch-layout parameters: conv weight (Cout, Cin), bias/gamma/beta (Cout,)."""
    dims, last_dim = layer_dims(input_dim, first_dim, block_num)
    assert last_dim == first_dim * (2 ** block_num)
    layers = []
    for (cin, cout) in dims:
        key, k1, k2, k3, k4 = jax.random.split(key, 5)
        w = jax.random.normal(k1, (cout, cin), jnp.float32) * 0.2
        b = jax.random.normal(k2, (cout,), jnp.float32) * 0.1       # conv bias (ref only)
        g = 1.0 + 0.1 * jax.random.normal(k3, (cout,), jnp.float32)  # BN gamma
        be = 0.1 * jax.random.normal(k4, (cout,), jnp.float32)       # BN beta
        layers.append((w, b, g, be))
    key, k1, k2 = jax.random.split(key, 3)
    reg_w = jax.random.normal(k1, (last_dim,), jnp.float32) * 0.2
    reg_b = jax.random.normal(k2, (), jnp.float32) * 0.1
    return {"layers": layers, "reg_w": reg_w, "reg_b": reg_b}


def pack_params(params, matmul_dtype=jnp.bfloat16):
    """One-time packing (call at init, NOT per forward).

    Returns:
      W: (n_bn+1, C_MAX, C_MAX) matmul_dtype  -- layer weights (Cout, Cin),
         zero-padded; block n_bn, row 0 holds the reg-layer weight row.
      G: (C_MAX, 2*n_bn+1) f32 -- gamma / beta columns (ZERO-padded beyond each
         layer's true Cout: load-bearing invariant) + reg bias at [0, 2*n_bn].
    """
    layers = params["layers"]
    n_bn = len(layers)
    W = jnp.zeros((n_bn + 1, C_MAX, C_MAX), jnp.float32)
    G = jnp.zeros((C_MAX, 2 * n_bn + 1), jnp.float32)
    for i, (w, _b, g, be) in enumerate(layers):
        cout, cin = w.shape
        W = W.at[i, :cout, :cin].set(w)
        G = G.at[:cout, i].set(g)            # gamma (zero-padded, NOT ones)
        G = G.at[:cout, n_bn + i].set(be)    # beta
        # conv bias _b intentionally dropped: training-mode BN mean-subtraction
        # cancels it exactly.
    reg_w = params["reg_w"]                                  # (C_last,)
    W = W.at[n_bn, 0, :reg_w.shape[0]].set(reg_w)
    G = G.at[0, 2 * n_bn].set(params["reg_b"])
    return W.astype(matmul_dtype), G


@jax.jit
def m2lp_forward(x, W, G):
    """x: (N, C_in, L) f32 (NCL, like PyTorch). W, G from pack_params().
    Returns (N, 1, L) f32."""
    N, cin, L = x.shape
    M = N * L
    n_bn = W.shape[0] - 1
    c_max = W.shape[1]
    # Lane-dense activation layout: (C, M), tokens on lanes. Transpose/pad/cast
    # fuse into this single jit (negligible next to the kernel).
    x_cm = jnp.transpose(x, (1, 0, 2)).reshape(cin, M)
    x_cm = jnp.pad(x_cm, ((0, c_max - cin), (0, 0))).astype(W.dtype)

    # Single-block kernel: padded activations + packed params are a few tens of
    # KiB -- far below VMEM on v5e/v6e (128 MiB) and v7x (64 MiB).
    out_row = pl.pallas_call(
        functools.partial(m2lp_kernel, n_bn=n_bn),
        out_shape=jax.ShapeDtypeStruct((1, M), jnp.float32),
        in_specs=[
            pl.BlockSpec(memory_space=pltpu.MemorySpace.VMEM),   # x (C, M)
            pl.BlockSpec(memory_space=pltpu.MemorySpace.VMEM),   # weight slab
            pl.BlockSpec(memory_space=pltpu.MemorySpace.VMEM),   # gamma/beta/bias slab
        ],
        out_specs=pl.BlockSpec(memory_space=pltpu.MemorySpace.VMEM),
    )(x_cm, W, G)

    return out_row.reshape(N, L)[:, None, :]                     # (N, 1, L)


def m2lp_reference(x, params):
    """Pure-JAX f32 reference with the module's exact semantics (with conv biases)."""
    N, cin, L = x.shape
    h = jnp.transpose(x, (0, 2, 1)).reshape(N * L, cin)
    for (w, b, g, be) in params["layers"]:
        y = h @ w.T + b
        mu = y.mean(axis=0, keepdims=True)
        var = ((y - mu) ** 2).mean(axis=0, keepdims=True)
        y = (y - mu) / jnp.sqrt(var + EPS) * g + be
        h = jnp.where(y > 0, y, ALPHA * y)
    out = h @ params["reg_w"] + params["reg_b"]                  # (N*L,)
    return jnp.transpose(out.reshape(N, L, 1), (0, 2, 1))        # (N, 1, L)


if __name__ == "__main__":
    key = jax.random.PRNGKey(0)
    key_x, key_p = jax.random.split(key)

    x = jax.random.normal(key_x, (N_BATCH, INPUT_DIM, SEQ_LEN), jnp.float32)
    params = init_params(key_p)
    ref = m2lp_reference(x, params)

    # 1) f32-operand path: proves the fused BN / layout / packing are exact.
    W32, G32 = pack_params(params, matmul_dtype=jnp.float32)
    out32 = jax.block_until_ready(m2lp_forward(x, W32, G32))
    assert out32.shape == (N_BATCH, 1, SEQ_LEN), out32.shape
    err32 = float(jnp.max(jnp.abs(out32 - ref)))
    assert err32 < 2e-3, ("f32 path mismatch", err32)

    # 2) bf16-operand / f32-accumulate fast path (per perf review): operand
    #    quantization (~2^-9 rel) compounds across 5 serially dependent BN
    #    layers, so a tight 1e-3 bound is not attainable; check a loose
    #    mixed-precision bound instead.
    Wbf, Gbf = pack_params(params, matmul_dtype=jnp.bfloat16)
    outbf = jax.block_until_ready(m2lp_forward(x, Wbf, Gbf))
    assert outbf.shape == (N_BATCH, 1, SEQ_LEN), outbf.shape
    errbf = float(jnp.max(jnp.abs(outbf - ref)))
    assert errbf < 0.25, ("bf16 path mismatch", errbf)

    print("KERNEL_OK")
</pallas_src>

<mosaic_0001>
module attributes {stable_mosaic.version = 11 : i64} {
  func.func @m2lp_kernel(%arg0: memref<32x128xf32, #tpu.memory_space<vmem>>, %arg1: memref<6x32x32xf32, #tpu.memory_space<vmem>>, %arg2: memref<32x11xf32, #tpu.memory_space<vmem>>, %arg3: memref<1x128xf32, #tpu.memory_space<vmem>>) attributes {dimension_semantics = [], scalar_prefetch = 0 : i64, scratch_operands = 0 : i64, tpu.core_type = #tpu.core_type<tc>} {
    %c0 = arith.constant 0 : index
    %c0_0 = arith.constant 0 : index
    %0 = vector.load %arg0[%c0, %c0_0] : memref<32x128xf32, #tpu.memory_space<vmem>>, vector<32x128xf32>
    %c0_1 = arith.constant 0 : index
    %c0_2 = arith.constant 0 : index
    %c0_3 = arith.constant 0 : index
    %1 = vector.load %arg1[%c0_1, %c0_2, %c0_3] : memref<6x32x32xf32, #tpu.memory_space<vmem>>, vector<1x32x32xf32>
    %2 = vector.shape_cast %1 : vector<1x32x32xf32> to vector<32x32xf32>
    %cst = arith.constant dense<0.000000e+00> : vector<32x128xf32>
    %3 = tpu.matmul %2, %0, %cst {dimension_numbers = #tpu.dot_dimension_numbers<[1], [0], [0], [1], [0, 0, 1, 1], [], []>} : vector<32x32xf32>, vector<32x128xf32>, vector<32x128xf32> -> vector<32x128xf32>
    %cst_4 = arith.constant dense<0.000000e+00> : vector<32xf32>
    %4 = vector.multi_reduction <add>, %3, %cst_4 [1] : vector<32x128xf32> to vector<32xf32>
    %5 = vector.shape_cast %4 : vector<32xf32> to vector<32x1xf32>
    %cst_5 = arith.constant 1.280000e+02 : f32
    %6 = vector.broadcast %cst_5 : f32 to vector<32x1xf32>
    %7 = arith.divf %5, %6 : vector<32x1xf32>
    %8 = vector.broadcast %7 : vector<32x1xf32> to vector<32x128xf32>
    %9 = arith.subf %3, %8 : vector<32x128xf32>
    %10 = arith.mulf %9, %9 : vector<32x128xf32>
    %cst_6 = arith.constant dense<0.000000e+00> : vector<32xf32>
    %11 = vector.multi_reduction <add>, %10, %cst_6 [1] : vector<32x128xf32> to vector<32xf32>
    %12 = vector.shape_cast %11 : vector<32xf32> to vector<32x1xf32>
    %cst_7 = arith.constant 1.280000e+02 : f32
    %13 = vector.broadcast %cst_7 : f32 to vector<32x1xf32>
    %14 = arith.divf %12, %13 : vector<32x1xf32>
    %c0_8 = arith.constant 0 : index
    %c0_9 = arith.constant 0 : index
    %15 = vector.load %arg2[%c0_8, %c0_9] : memref<32x11xf32, #tpu.memory_space<vmem>>, vector<32x1xf32>
    %cst_10 = arith.constant 9.99999974E-6 : f32
    %16 = vector.broadcast %cst_10 : f32 to vector<32x1xf32>
    %17 = arith.addf %14, %16 : vector<32x1xf32>
    %18 = math.rsqrt %17 : vector<32x1xf32>
    %19 = arith.mulf %15, %18 : vector<32x1xf32>
    %20 = vector.broadcast %19 : vector<32x1xf32> to vector<32x128xf32>
    %21 = arith.mulf %9, %20 : vector<32x128xf32>
    %c0_11 = arith.constant 0 : index
    %c5 = arith.constant 5 : index
    %22 = vector.load %arg2[%c0_11, %c5] : memref<32x11xf32, #tpu.memory_space<vmem>>, vector<32x1xf32>
    %23 = vector.broadcast %22 : vector<32x1xf32> to vector<32x128xf32>
    %24 = arith.addf %21, %23 : vector<32x128xf32>
    %cst_12 = arith.constant 0.00999999977 : f32
    %25 = vector.broadcast %cst_12 : f32 to vector<32x128xf32>
    %26 = arith.mulf %25, %24 : vector<32x128xf32>
    %27 = arith.maximumf %24, %26 : vector<32x128xf32>
    %c1 = arith.constant 1 : index
    %c0_13 = arith.constant 0 : index
    %c0_14 = arith.constant 0 : index
    %28 = vector.load %arg1[%c1, %c0_13, %c0_14] : memref<6x32x32xf32, #tpu.memory_space<vmem>>, vector<1x32x32xf32>
    %29 = vector.shape_cast %28 : vector<1x32x32xf32> to vector<32x32xf32>
    %cst_15 = arith.constant dense<0.000000e+00> : vector<32x128xf32>
    %30 = tpu.matmul %29, %27, %cst_15 {dimension_numbers = #tpu.dot_dimension_numbers<[1], [0], [0], [1], [0, 0, 1, 1], [], []>} : vector<32x32xf32>, vector<32x128xf32>, vector<32x128xf32> -> vector<32x128xf32>
    %cst_16 = arith.constant dense<0.000000e+00> : vector<32xf32>
    %31 = vector.multi_reduction <add>, %30, %cst_16 [1] : vector<32x128xf32> to vector<32xf32>
    %32 = vector.shape_cast %31 : vector<32xf32> to vector<32x1xf32>
    %cst_17 = arith.constant 1.280000e+02 : f32
    %33 = vector.broadcast %cst_17 : f32 to vector<32x1xf32>
    %34 = arith.divf %32, %33 : vector<32x1xf32>
    %35 = vector.broadcast %34 : vector<32x1xf32> to vector<32x128xf32>
    %36 = arith.subf %30, %35 : vector<32x128xf32>
    %37 = arith.mulf %36, %36 : vector<32x128xf32>
    %cst_18 = arith.constant dense<0.000000e+00> : vector<32xf32>
    %38 = vector.multi_reduction <add>, %37, %cst_18 [1] : vector<32x128xf32> to vector<32xf32>
    %39 = vector.shape_cast %38 : vector<32xf32> to vector<32x1xf32>
    %cst_19 = arith.constant 1.280000e+02 : f32
    %40 = vector.broadcast %cst_19 : f32 to vector<32x1xf32>
    %41 = arith.divf %39, %40 : vector<32x1xf32>
    %c0_20 = arith.constant 0 : index
    %c1_21 = arith.constant 1 : index
    %42 = vector.load %arg2[%c0_20, %c1_21] : memref<32x11xf32, #tpu.memory_space<vmem>>, vector<32x1xf32>
    %cst_22 = arith.constant 9.99999974E-6 : f32
    %43 = vector.broadcast %cst_22 : f32 to vector<32x1xf32>
    %44 = arith.addf %41, %43 : vector<32x1xf32>
    %45 = math.rsqrt %44 : vector<32x1xf32>
    %46 = arith.mulf %42, %45 : vector<32x1xf32>
    %47 = vector.broadcast %46 : vector<32x1xf32> to vector<32x128xf32>
    %48 = arith.mulf %36, %47 : vector<32x128xf32>
    %c0_23 = arith.constant 0 : index
    %c6 = arith.constant 6 : index
    %49 = vector.load %arg2[%c0_23, %c6] : memref<32x11xf32, #tpu.memory_space<vmem>>, vector<32x1xf32>
    %50 = vector.broadcast %49 : vector<32x1xf32> to vector<32x128xf32>
    %51 = arith.addf %48, %50 : vector<32x128xf32>
    %cst_24 = arith.constant 0.00999999977 : f32
    %52 = vector.broadcast %cst_24 : f32 to vector<32x128xf32>
    %53 = arith.mulf %52, %51 : vector<32x128xf32>
    %54 = arith.maximumf %51, %53 : vector<32x128xf32>
    %c2 = arith.constant 2 : index
    %c0_25 = arith.constant 0 : index
    %c0_26 = arith.constant 0 : index
    %55 = vector.load %arg1[%c2, %c0_25, %c0_26] : memref<6x32x32xf32, #tpu.memory_space<vmem>>, vector<1x32x32xf32>
    %56 = vector.shape_cast %55 : vector<1x32x32xf32> to vector<32x32xf32>
    %cst_27 = arith.constant dense<0.000000e+00> : vector<32x128xf32>
    %57 = tpu.matmul %56, %54, %cst_27 {dimension_numbers = #tpu.dot_dimension_numbers<[1], [0], [0], [1], [0, 0, 1, 1], [], []>} : vector<32x32xf32>, vector<32x128xf32>, vector<32x128xf32> -> vector<32x128xf32>
    %cst_28 = arith.constant dense<0.000000e+00> : vector<32xf32>
    %58 = vector.multi_reduction <add>, %57, %cst_28 [1] : vector<32x128xf32> to vector<32xf32>
    %59 = vector.shape_cast %58 : vector<32xf32> to vector<32x1xf32>
    %cst_29 = arith.constant 1.280000e+02 : f32
    %60 = vector.broadcast %cst_29 : f32 to vector<32x1xf32>
    %61 = arith.divf %59, %60 : vector<32x1xf32>
    %62 = vector.broadcast %61 : vector<32x1xf32> to vector<32x128xf32>
    %63 = arith.subf %57, %62 : vector<32x128xf32>
    %64 = arith.mulf %63, %63 : vector<32x128xf32>
    %cst_30 = arith.constant dense<0.000000e+00> : vector<32xf32>
    %65 = vector.multi_reduction <add>, %64, %cst_30 [1] : vector<32x128xf32> to vector<32xf32>
    %66 = vector.shape_cast %65 : vector<32xf32> to vector<32x1xf32>
    %cst_31 = arith.constant 1.280000e+02 : f32
    %67 = vector.broadcast %cst_31 : f32 to vector<32x1xf32>
    %68 = arith.divf %66, %67 : vector<32x1xf32>
    %c0_32 = arith.constant 0 : index
    %c2_33 = arith.constant 2 : index
    %69 = vector.load %arg2[%c0_32, %c2_33] : memref<32x11xf32, #tpu.memory_space<vmem>>, vector<32x1xf32>
    %cst_34 = arith.constant 9.99999974E-6 : f32
    %70 = vector.broadcast %cst_34 : f32 to vector<32x1xf32>
    %71 = arith.addf %68, %70 : vector<32x1xf32>
    %72 = math.rsqrt %71 : vector<32x1xf32>
    %73 = arith.mulf %69, %72 : vector<32x1xf32>
    %74 = vector.broadcast %73 : vector<32x1xf32> to vector<32x128xf32>
    %75 = arith.mulf %63, %74 : vector<32x128xf32>
    %c0_35 = arith.constant 0 : index
    %c7 = arith.constant 7 : index
    %76 = vector.load %arg2[%c0_35, %c7] : memref<32x11xf32, #tpu.memory_space<vmem>>, vector<32x1xf32>
    %77 = vector.broadcast %76 : vector<32x1xf32> to vector<32x128xf32>
    %78 = arith.addf %75, %77 : vector<32x128xf32>
    %cst_36 = arith.constant 0.00999999977 : f32
    %79 = vector.broadcast %cst_36 : f32 to vector<32x128xf32>
    %80 = arith.mulf %79, %78 : vector<32x128xf32>
    %81 = arith.maximumf %78, %80 : vector<32x128xf32>
    %c3 = arith.constant 3 : index
    %c0_37 = arith.constant 0 : index
    %c0_38 = arith.constant 0 : index
    %82 = vector.load %arg1[%c3, %c0_37, %c0_38] : memref<6x32x32xf32, #tpu.memory_space<vmem>>, vector<1x32x32xf32>
    %83 = vector.shape_cast %82 : vector<1x32x32xf32> to vector<32x32xf32>
    %cst_39 = arith.constant dense<0.000000e+00> : vector<32x128xf32>
    %84 = tpu.matmul %83, %81, %cst_39 {dimension_numbers = #tpu.dot_dimension_numbers<[1], [0], [0], [1], [0, 0, 1, 1], [], []>} : vector<32x32xf32>, vector<32x128xf32>, vector<32x128xf32> -> vector<32x128xf32>
    %cst_40 = arith.constant dense<0.000000e+00> : vector<32xf32>
    %85 = vector.multi_reduction <add>, %84, %cst_40 [1] : vector<32x128xf32> to vector<32xf32>
    %86 = vector.shape_cast %85 : vector<32xf32> to vector<32x1xf32>
    %cst_41 = arith.constant 1.280000e+02 : f32
    %87 = vector.broadcast %cst_41 : f32 to vector<32x1xf32>
    %88 = arith.divf %86, %87 : vector<32x1xf32>
    %89 = vector.broadcast %88 : vector<32x1xf32> to vector<32x128xf32>
    %90 = arith.subf %84, %89 : vector<32x128xf32>
    %91 = arith.mulf %90, %90 : vector<32x128xf32>
    %cst_42 = arith.constant dense<0.000000e+00> : vector<32xf32>
    %92 = vector.multi_reduction <add>, %91, %cst_42 [1] : vector<32x128xf32> to vector<32xf32>
    %93 = vector.shape_cast %92 : vector<32xf32> to vector<32x1xf32>
    %cst_43 = arith.constant 1.280000e+02 : f32
    %94 = vector.broadcast %cst_43 : f32 to vector<32x1xf32>
    %95 = arith.divf %93, %94 : vector<32x1xf32>
    %c0_44 = arith.constant 0 : index
    %c3_45 = arith.constant 3 : index
    %96 = vector.load %arg2[%c0_44, %c3_45] : memref<32x11xf32, #tpu.memory_space<vmem>>, vector<32x1xf32>
    %cst_46 = arith.constant 9.99999974E-6 : f32
    %97 = vector.broadcast %cst_46 : f32 to vector<32x1xf32>
    %98 = arith.addf %95, %97 : vector<32x1xf32>
    %99 = math.rsqrt %98 : vector<32x1xf32>
    %100 = arith.mulf %96, %99 : vector<32x1xf32>
    %101 = vector.broadcast %100 : vector<32x1xf32> to vector<32x128xf32>
    %102 = arith.mulf %90, %101 : vector<32x128xf32>
    %c0_47 = arith.constant 0 : index
    %c8 = arith.constant 8 : index
    %103 = vector.load %arg2[%c0_47, %c8] : memref<32x11xf32, #tpu.memory_space<vmem>>, vector<32x1xf32>
    %104 = vector.broadcast %103 : vector<32x1xf32> to vector<32x128xf32>
    %105 = arith.addf %102, %104 : vector<32x128xf32>
    %cst_48 = arith.constant 0.00999999977 : f32
    %106 = vector.broadcast %cst_48 : f32 to vector<32x128xf32>
    %107 = arith.mulf %106, %105 : vector<32x128xf32>
    %108 = arith.maximumf %105, %107 : vector<32x128xf32>
    %c4 = arith.constant 4 : index
    %c0_49 = arith.constant 0 : index
    %c0_50 = arith.constant 0 : index
    %109 = vector.load %arg1[%c4, %c0_49, %c0_50] : memref<6x32x32xf32, #tpu.memory_space<vmem>>, vector<1x32x32xf32>
    %110 = vector.shape_cast %109 : vector<1x32x32xf32> to vector<32x32xf32>
    %cst_51 = arith.constant dense<0.000000e+00> : vector<32x128xf32>
    %111 = tpu.matmul %110, %108, %cst_51 {dimension_numbers = #tpu.dot_dimension_numbers<[1], [0], [0], [1], [0, 0, 1, 1], [], []>} : vector<32x32xf32>, vector<32x128xf32>, vector<32x128xf32> -> vector<32x128xf32>
    %cst_52 = arith.constant dense<0.000000e+00> : vector<32xf32>
    %112 = vector.multi_reduction <add>, %111, %cst_52 [1] : vector<32x128xf32> to vector<32xf32>
    %113 = vector.shape_cast %112 : vector<32xf32> to vector<32x1xf32>
    %cst_53 = arith.constant 1.280000e+02 : f32
    %114 = vector.broadcast %cst_53 : f32 to vector<32x1xf32>
    %115 = arith.divf %113, %114 : vector<32x1xf32>
    %116 = vector.broadcast %115 : vector<32x1xf32> to vector<32x128xf32>
    %117 = arith.subf %111, %116 : vector<32x128xf32>
    %118 = arith.mulf %117, %117 : vector<32x128xf32>
    %cst_54 = arith.constant dense<0.000000e+00> : vector<32xf32>
    %119 = vector.multi_reduction <add>, %118, %cst_54 [1] : vector<32x128xf32> to vector<32xf32>
    %120 = vector.shape_cast %119 : vector<32xf32> to vector<32x1xf32>
    %cst_55 = arith.constant 1.280000e+02 : f32
    %121 = vector.broadcast %cst_55 : f32 to vector<32x1xf32>
    %122 = arith.divf %120, %121 : vector<32x1xf32>
    %c0_56 = arith.constant 0 : index
    %c4_57 = arith.constant 4 : index
    %123 = vector.load %arg2[%c0_56, %c4_57] : memref<32x11xf32, #tpu.memory_space<vmem>>, vector<32x1xf32>
    %cst_58 = arith.constant 9.99999974E-6 : f32
    %124 = vector.broadcast %cst_58 : f32 to vector<32x1xf32>
    %125 = arith.addf %122, %124 : vector<32x1xf32>
    %126 = math.rsqrt %125 : vector<32x1xf32>
    %127 = arith.mulf %123, %126 : vector<32x1xf32>
    %128 = vector.broadcast %127 : vector<32x1xf32> to vector<32x128xf32>
    %129 = arith.mulf %117, %128 : vector<32x128xf32>
    %c0_59 = arith.constant 0 : index
    %c9 = arith.constant 9 : index
    %130 = vector.load %arg2[%c0_59, %c9] : memref<32x11xf32, #tpu.memory_space<vmem>>, vector<32x1xf32>
    %131 = vector.broadcast %130 : vector<32x1xf32> to vector<32x128xf32>
    %132 = arith.addf %129, %131 : vector<32x128xf32>
    %cst_60 = arith.constant 0.00999999977 : f32
    %133 = vector.broadcast %cst_60 : f32 to vector<32x128xf32>
    %134 = arith.mulf %133, %132 : vector<32x128xf32>
    %135 = arith.maximumf %132, %134 : vector<32x128xf32>
    %c5_61 = arith.constant 5 : index
    %c0_62 = arith.constant 0 : index
    %c0_63 = arith.constant 0 : index
    %136 = vector.load %arg1[%c5_61, %c0_62, %c0_63] : memref<6x32x32xf32, #tpu.memory_space<vmem>>, vector<1x32x32xf32>
    %137 = vector.shape_cast %136 : vector<1x32x32xf32> to vector<32x32xf32>
    %138 = vector.extract_strided_slice %137 {offsets = [0, 0], sizes = [1, 32], strides = [1, 1]} : vector<32x32xf32> to vector<1x32xf32>
    %cst_64 = arith.constant dense<0.000000e+00> : vector<1x128xf32>
    %139 = tpu.matmul %138, %135, %cst_64 {dimension_numbers = #tpu.dot_dimension_numbers<[1], [0], [0], [1], [0, 0, 1, 1], [], []>} : vector<1x32xf32>, vector<32x128xf32>, vector<1x128xf32> -> vector<1x128xf32>
    %c0_65 = arith.constant 0 : index
    %c10 = arith.constant 10 : index
    %140 = vector.load %arg2[%c0_65, %c10] : memref<32x11xf32, #tpu.memory_space<vmem>>, vector<1x1xf32>
    %141 = vector.broadcast %140 : vector<1x1xf32> to vector<1x128xf32>
    %142 = arith.addf %139, %141 : vector<1x128xf32>
    %c0_66 = arith.constant 0 : index
    %c0_67 = arith.constant 0 : index
    %143 = vector.load %arg3[%c0_66, %c0_67] : memref<1x128xf32, #tpu.memory_space<vmem>>, vector<1x128xf32>
    tpu.vector_store %arg3[%c0_66, %c0_67], %142 {strides = array<i32>} : memref<1x128xf32, #tpu.memory_space<vmem>>, vector<1x128xf32>,
    return
  }
}

</mosaic_0001>

<bundles_post_ra>
// kernel: m2lp_forward.1
= control target key start
LH: loop header
LB: loop body
LE: loop exit
PB: predicated region body
PF: predicated region fallthrough
CT: control target
= control target key end

     0   :  { %8 = vsyncpa [#allocation3], 0  ;;  %s1417_s12 = smov [#allocation2]   ;;  %s1625_s0 = inlined_call_operand.vmem [shape: f32[32,128], index: 0, kind: input, shape index: {}]   ;;  %s1626_s1 = inlined_call_operand.hbm [shape: f32[6,32,32], index: 1, kind: input, shape index: {}]   ;;  %s1627_s2 = inlined_call_operand.vmem [shape: f32[32,11], index: 2, kind: input, shape index: {}]   ;;  %s1628_s3 = inlined_call_operand.vmem [shape: f32[1,128], index: 3, kind: output, shape index: {}]  }
   0x1   :  { %s16_s13 = sshll.u32 %s1417_s12, 4  ;;  %s1393_s16 = scalar_lea.hbm %s1626_s1, 3072  ;;  %s17_s13 = int_to_ptr.vmem [resolvable:$true] %s16_s13 }
   0x2   :  { %p1394_p0 = scmp.ne.s32.totalorder %s1626_s1, %s1393_s16  ;;  %p1397_p1 = scmp.lt.u32.totalorder %s1393_s16, %s1626_s1 }
   0x4   :  { %p1399_p2 = pnand %p1397_p1, %p1394_p0 }
   0x6   :  { %1402 = shalt.err (!%p1399_p2)
}
   0x7   :  { %s1403_s21 = scalar_lea.vmem %s17_s13, 3072  ;;  %p1408_p4 = scmp.lt.s32.totalorder %s17_s13, %s17_s13 }
   0x8   :  { %p1404_p3 = scmp.ne.s32.totalorder %s17_s13, %s1403_s21  ;;  %p1409_p5 = scmp.lt.s32.totalorder %s1403_s21, %s1403_s21 }
   0xa   :  { %p1410_p6 = por %p1409_p5, %p1408_p4 }
   0xc   :  { %p1411_p7 = pnand %p1410_p6, %p1404_p3 }
   0xe   :  { %1414 = shalt.err (!%p1411_p7)
}
   0xf   :  { %s1418_s22 = smov 128   ;;  %s1419_s23 = smov 8  }
  0x10   :  { %22 = dma.hbm_to_vmem [thread:$0]  %s1626_s1, 3072, %s17_s13, [#allocation3], %s1418_s22, %s1418_s22, %s1419_s23  }
  0x11   :  { %1415 = dma.done.wait [#allocation3], 3072  }
  0x12   :  { %1416 = vsyncadd [#allocation3], 4294964224  ;;  %vm36_vm0 = vcmask 261120   ;;  %v28_v0 = vld [vmem:[%s1625_s0] sm:$0xff]  ;;  %v29_v1 = vld [vmem:[%s1625_s0 + $0x8] sm:$0xff]  ;;  %v1420_v30 = vmov 0  }
  0x13   :  { %v30_v2 = vld [vmem:[%s1625_s0 + $0x10] sm:$0xff]  ;;  %v1265_v3 = vpack.c.bf16 %v29_v1, %v28_v0  ;;  %v31_v4 = vld [vmem:[%s1625_s0 + $0x18] sm:$0xff]  ;;  %v32_v5 = vld [vmem:[#allocation2] sm:$0xff]  ;;  %1328 = vset.pattern.permute.xlu0 %v1420_v30  ;;  %1329 = vset.pattern.permute.xlu1 %v1420_v30  ;;  %v1421_v49 = vmov 5   ;;  %vm1431_vm1 = vmmov 0  }
  0x14   :  { %v1269_v6 = vpack.c.bf16 %v31_v4, %v30_v2  ;;  %1192 = vmatprep.mubr.msk.f32.mxu0 %vm36_vm0, %v32_v5  ;;  %v33_v7 = vld [vmem:[#allocation2 + $0x8] sm:$0xff]  ;;  %v34_v8 = vld [vmem:[#allocation2 + $0x10] sm:$0xff]  ;;  %v35_v9 = vld [vmem:[#allocation2 + $0x18] sm:$0xff] }
  0x15   :  { %1266 = vmatprep.subr.bf16.mxu0 %v1265_v3  ;;  %v1497_v37 = vld [vmem:[%s1627_s2] sm:$0xff]  ;;  %v1503_v42 = vld [vmem:[%s1627_s2 + $0x8] sm:$0xff]  ;;  %v1511_v50 = vld [vmem:[%s1627_s2 + $0x10] sm:$0xff] }
  0x16   :  { %1268 = vmatpush3.bf16.msra.mxu0 %v1265_v3  ;;  %v1517_v52 = vld [vmem:[%s1627_s2 + $0x18] sm:$0xff]  ;;  %v240_v56 = vld [vmem:[#allocation2 + $0x20] sm:$0xff] }
  0x17   :  { %1270 = vmatprep.subr.bf16.mxu0 %v1269_v6  ;;  %1206 = vmatprep.mubr.msk.f32.mxu1 %vm36_vm0, %v240_v56 }
  0x1a   :  { %1272 = vmatpush3.bf16.msra.mxu0 %v1269_v6 }
  0x1d   :  { %1193 = vmatmul.mubr.msk.f32.vlgmr.msra.gmra.mrb[0].mxu0 %vm36_vm0, %v33_v7 }
  0x1e   :  { %1195 = vmatprep.mubr.msk.f32.mxu0 %vm36_vm0, %v34_v8 }
  0x21   :  { %1196 = vmatmul.mubr.msk.f32.gmra.mrb[2].mxu0 %vm36_vm0, %v35_v9 }
  0xf0   :  { %v1194_v10 = vpop.f32.mrb[0].mxu0 }
  0xf1   :  { %v115_v11 = vpop.f32.mrb[1].mxu0 }
  0xf2   :  { %134 = vadd.xlane.f32.xlu0 %v115_v11 }
  0xf4   :  { %v1197_v12 = vpop.f32.mrb[2].mxu0 }
  0xf5   :  { %v125_v13 = vpop.f32.mrb[3].mxu0 }
  0xf6   :  { %136 = vadd.xlane.f32.xlu0 %v1194_v10  ;;  %138 = vadd.xlane.f32.xlu1 %v125_v13 }
  0xfa   :  { %140 = vadd.xlane.f32.xlu1 %v1197_v12 }
 0x17f   :  { %v135_v14 = vpop.xlane.xlu0 %134 }
 0x180   :  { %v143_v15 = vmul.f32 0.0078125, %v135_v14 }
 0x182   :  { %v1482_v16 = vsub.f32 %v115_v11, %v143_v15 }
 0x183   :  { %v137_v17 = vpop.xlane.xlu0 %136  ;;  %v139_v18 = vpop.xlane.xlu1 %138 }
 0x184   :  { %v144_v19 = vmul.f32 0.0078125, %v137_v17  ;;  %v145_v20 = vmul.f32 0.0078125, %v139_v18  ;;  %v151_v21 = vmul.f32 %v1482_v16, %v1482_v16 }
 0x186   :  { %v148_v22 = vsub.f32 %v1194_v10, %v144_v19  ;;  %155 = vadd.xlane.f32.xlu0 %v151_v21  ;;  %v1486_v23 = vsub.f32 %v125_v13, %v145_v20  ;;  %v241_v19 = vld [vmem:[#allocation2 + $0x28] sm:$0xff]  ;;  %v242_v20 = vld [vmem:[#allocation2 + $0x30] sm:$0xff]  ;;  %v243_v21 = vld [vmem:[#allocation2 + $0x38] sm:$0xff] }
 0x187   :  { %v141_v24 = vpop.xlane.xlu1 %140 }
 0x188   :  { %v146_v25 = vmul.f32 0.0078125, %v141_v24  ;;  %v152_v26 = vmul.f32 %v148_v22, %v148_v22  ;;  %v153_v27 = vmul.f32 %v1486_v23, %v1486_v23 }
 0x18a   :  { %157 = vadd.xlane.f32.xlu1 %v152_v26  ;;  %159 = vadd.xlane.f32.xlu0 %v153_v27  ;;  %v1490_v28 = vsub.f32 %v1197_v12, %v146_v25 }
 0x18c   :  { %v154_v29 = vmul.f32 %v1490_v28, %v1490_v28 }
 0x18e   :  { %161 = vadd.xlane.f32.xlu1 %v154_v29 }
 0x213   :  { %v156_v31 = vpop.xlane.xlu0 %155 }
 0x214   :  { %v163_v32 = vmul.f32 0.0078125, %v156_v31 }
 0x216   :  { %v171_v33 = vadd.f32 1e-05, %v163_v32 }
 0x217   :  { %v158_v34 = vpop.xlane.xlu1 %157  ;;  %v160_v43 = vpop.xlane.xlu0 %159 }
 0x218   :  { %1353 = vrsqrt.f32 %v171_v33  ;;  %v164_v35 = vmul.f32 0.0078125, %v158_v34  ;;  %v165_v46 = vmul.f32 0.0078125, %v160_v43 }
 0x21a   :  { %v172_v36 = vadd.f32 1e-05, %v164_v35  ;;  %v173_v48 = vadd.f32 1e-05, %v165_v46 }
 0x21b   :  { %v162_v39 = vpop.xlane.xlu1 %161 }
 0x21c   :  { %1355 = vrsqrt.f32 %v172_v36  ;;  %v166_v41 = vmul.f32 0.0078125, %v162_v39 }
 0x21e   :  { %v174_v47 = vadd.f32 1e-05, %v166_v41 }
 0x220   :  { %1357 = vrsqrt.f32 %v174_v47 }
 0x221   :  { %1359 = vrsqrt.f32 %v173_v48 }
 0x222   :  { %v1354_v38 = vpop.eup %1353 }
 0x223   :  { %v179_v40 = vmul.f32 %v1354_v38, %v1497_v37 }
 0x225   :  { %185 = vperm.xlu0 %1328, %v179_v40  }
 0x226   :  { %v1356_v44 = vpop.eup %1355 }
 0x227   :  { %v180_v45 = vmul.f32 %v1356_v44, %v1503_v42  ;;  %v1422_v44 = vmov 1  }
 0x229   :  { %190 = vperm.xlu1 %1329, %v180_v45   ;;  %1333 = vset.pattern.permute.xlu0 %v1422_v44 }
 0x22a   :  { %v1358_v51 = vpop.eup %1357 }
 0x22b   :  { %v182_v53 = vmul.f32 %v1358_v51, %v1517_v52  ;;  %v1360_v54 = vpop.eup %1359 }
 0x22c   :  { %v181_v55 = vmul.f32 %v1360_v54, %v1511_v50 }
 0x22d   :  { %1330 = vset.pattern.permute.xlu1 %v1421_v49 }
 0x22e   :  { %209 = vperm.xlu1 %1330, %v1497_v37  }
 0x232   :  { %214 = vperm.xlu1 %1330, %v1503_v42  }
 0x236   :  { %219 = vperm.xlu1 %1330, %v1511_v50  }
 0x23a   :  { %1331 = vset.pattern.permute.xlu1 %v1420_v30 }
 0x23b   :  { %200 = vperm.xlu1 %1331, %v182_v53  }
 0x23f   :  { %195 = vperm.xlu1 %1331, %v181_v55  }
 0x243   :  { %1332 = vset.pattern.permute.xlu1 %v1421_v49 }
 0x244   :  { %224 = vperm.xlu1 %1332, %v1517_v52  }
 0x248   :  { %1334 = vset.pattern.permute.xlu1 %v1422_v44 }
 0x2a4   :  { %v186_v58 = vpop.permute.xlu0 %185 }
 0x2a5   :  { %v203_v59 = vmul.f32 %v186_v58, %v1482_v16 }
 0x2a8   :  { %v191_v57 = vpop.permute.xlu1 %190 }
 0x2a9   :  { %v204_v62 = vmul.f32 %v191_v57, %v148_v22 }
 0x2ad   :  { %v210_v60 = vpop.permute.xlu1 %209 }
 0x2ae   :  { %v227_v61 = vadd.f32 %v210_v60, %v203_v59 }
 0x2b0   :  { %v231_v0 = vmul.f32 0.01, %v227_v61 }
 0x2b1   :  { %v215_v63 = vpop.permute.xlu1 %214 }
 0x2b2   :  { %v228_v1 = vadd.f32 %v215_v63, %v204_v62  ;;  %v235_v5 = vmax.f32 %v227_v61, %v231_v0  ;;  %v1423_v63 = vmov 6  }
 0x2b4   :  { %v232_v2 = vmul.f32 0.01, %v228_v1 }
 0x2b5   :  { %v220_v3 = vpop.permute.xlu1 %219 }
 0x2b6   :  { %v236_v4 = vmax.f32 %v228_v1, %v232_v2 }
 0x2b8   :  { %v1273_v6 = vpack.c.bf16 %v236_v4, %v235_v5  ;;  %v438_v4 = vld [vmem:[#allocation2 + $0x40] sm:$0xff] }
 0x2b9   :  { %1220 = vmatprep.mubr.msk.f32.mxu0 %vm36_vm0, %v438_v4 }
 0x2ba   :  { %1274 = vmatprep.subr.bf16.mxu1 %v1273_v6  ;;  %v201_v7 = vpop.permute.xlu1 %200 }
 0x2bb   :  { %1276 = vmatpush3.bf16.msra.mxu1 %v1273_v6  ;;  %v206_v11 = vmul.f32 %v201_v7, %v1490_v28 }
 0x2be   :  { %v196_v8 = vpop.permute.xlu1 %195 }
 0x2bf   :  { %v205_v9 = vmul.f32 %v196_v8, %v1486_v23 }
 0x2c1   :  { %v229_v10 = vadd.f32 %v220_v3, %v205_v9 }
 0x2c3   :  { %v225_v12 = vpop.permute.xlu1 %224  ;;  %v233_v13 = vmul.f32 0.01, %v229_v10 }
 0x2c4   :  { %v230_v14 = vadd.f32 %v225_v12, %v206_v11 }
 0x2c5   :  { %v237_v16 = vmax.f32 %v229_v10, %v233_v13 }
 0x2c6   :  { %v234_v15 = vmul.f32 0.01, %v230_v14 }
 0x2c8   :  { %v238_v17 = vmax.f32 %v230_v14, %v234_v15 }
 0x2ca   :  { %v1277_v18 = vpack.c.bf16 %v238_v17, %v237_v16 }
 0x2cc   :  { %1278 = vmatprep.subr.bf16.mxu1 %v1277_v18 }
 0x2cd   :  { %1280 = vmatpush3.bf16.msra.mxu1 %v1277_v18 }
 0x2d0   :  { %1207 = vmatmul.mubr.msk.f32.vlgmr.msra.gmra.mrb[0].mxu1 %vm36_vm0, %v241_v19 }
 0x2d1   :  { %1209 = vmatprep.mubr.msk.f32.mxu1 %vm36_vm0, %v242_v20 }
 0x2d4   :  { %1210 = vmatmul.mubr.msk.f32.gmra.mrb[2].mxu1 %vm36_vm0, %v243_v21 }
 0x3a3   :  { %v1208_v22 = vpop.f32.mrb[0].mxu1 }
 0x3a4   :  { %343 = vadd.xlane.f32.xlu0 %v1208_v22  ;;  %v322_v23 = vpop.f32.mrb[1].mxu1 }
 0x3a5   :  { %341 = vadd.xlane.f32.xlu1 %v322_v23 }
 0x3a7   :  { %v1211_v24 = vpop.f32.mrb[2].mxu1 }
 0x3a8   :  { %v332_v25 = vpop.f32.mrb[3].mxu1 }
 0x3a9   :  { %347 = vadd.xlane.f32.xlu1 %v1211_v24  ;;  %345 = vadd.xlane.f32.xlu0 %v332_v25 }
 0x431   :  { %v344_v26 = vpop.xlane.xlu0 %343 }
 0x432   :  { %v350_v27 = vmul.f32 0.0078125, %v344_v26  ;;  %v342_v28 = vpop.xlane.xlu1 %341 }
 0x433   :  { %v349_v29 = vmul.f32 0.0078125, %v342_v28 }
 0x434   :  { %v354_v30 = vsub.f32 %v1208_v22, %v350_v27 }
 0x435   :  { %v353_v31 = vsub.f32 %v322_v23, %v349_v29 }
 0x436   :  { %v348_v32 = vpop.xlane.xlu1 %347  ;;  %v346_v33 = vpop.xlane.xlu0 %345  ;;  %v358_v34 = vmul.f32 %v354_v30, %v354_v30 }
 0x437   :  { %v352_v35 = vmul.f32 0.0078125, %v348_v32  ;;  %v351_v36 = vmul.f32 0.0078125, %v346_v33  ;;  %v357_v38 = vmul.f32 %v353_v31, %v353_v31  ;;  %v440_v32 = vld [vmem:[#allocation2 + $0x50] sm:$0xff]  ;;  %v441_v33 = vld [vmem:[#allocation2 + $0x58] sm:$0xff] }
 0x438   :  { %363 = vadd.xlane.f32.xlu1 %v358_v34 }
 0x439   :  { %v1529_v39 = vsub.f32 %v1211_v24, %v352_v35  ;;  %v1531_v40 = vsub.f32 %v332_v25, %v351_v36  ;;  %361 = vadd.xlane.f32.xlu0 %v357_v38 }
 0x43b   :  { %v360_v41 = vmul.f32 %v1529_v39, %v1529_v39  ;;  %v359_v43 = vmul.f32 %v1531_v40, %v1531_v40 }
 0x43d   :  { %367 = vadd.xlane.f32.xlu1 %v360_v41  ;;  %365 = vadd.xlane.f32.xlu0 %v359_v43 }
 0x4c5   :  { %v364_v45 = vpop.xlane.xlu1 %363 }
 0x4c6   :  { %v370_v46 = vmul.f32 0.0078125, %v364_v45  ;;  %v362_v47 = vpop.xlane.xlu0 %361 }
 0x4c7   :  { %v369_v48 = vmul.f32 0.0078125, %v362_v47 }
 0x4c8   :  { %v374_v49 = vadd.f32 1e-05, %v370_v46 }
 0x4c9   :  { %v373_v51 = vadd.f32 1e-05, %v369_v48 }
 0x4ca   :  { %1361 = vrsqrt.f32 %v374_v49  ;;  %v368_v53 = vpop.xlane.xlu1 %367  ;;  %v366_v55 = vpop.xlane.xlu0 %365 }
 0x4cb   :  { %1363 = vrsqrt.f32 %v373_v51  ;;  %v372_v54 = vmul.f32 0.0078125, %v368_v53  ;;  %v371_v60 = vmul.f32 0.0078125, %v366_v55 }
 0x4cd   :  { %v376_v59 = vadd.f32 1e-05, %v372_v54  ;;  %v375_v62 = vadd.f32 1e-05, %v371_v60 }
 0x4cf   :  { %1365 = vrsqrt.f32 %v376_v59  ;;  %v1425_v59 = vmov 2  }
 0x4d0   :  { %1367 = vrsqrt.f32 %v375_v62 }
 0x4d4   :  { %v1362_v56 = vpop.eup %1361 }
 0x4d5   :  { %v1364_v57 = vpop.eup %1363  ;;  %v382_v58 = vmul.f32 %v1362_v56, %v1503_v42 }
 0x4d6   :  { %v381_v61 = vmul.f32 %v1364_v57, %v1497_v37 }
 0x4d7   :  { %392 = vperm.xlu1 %1334, %v382_v58   ;;  %v1424_v58 = vmov 7  }
 0x4d8   :  { %387 = vperm.xlu0 %1333, %v381_v61  }
 0x4d9   :  { %v1366_v0 = vpop.eup %1365 }
 0x4da   :  { %v384_v1 = vmul.f32 %v1366_v0, %v1517_v52  ;;  %v1368_v2 = vpop.eup %1367 }
 0x4db   :  { %1335 = vset.pattern.permute.xlu1 %v1423_v63  ;;  %v383_v3 = vmul.f32 %v1368_v2, %v1511_v50 }
 0x4dc   :  { %410 = vperm.xlu1 %1335, %v1497_v37   ;;  %1338 = vset.pattern.permute.xlu0 %v1425_v59 }
 0x4e0   :  { %414 = vperm.xlu1 %1335, %v1503_v42  }
 0x4e4   :  { %418 = vperm.xlu1 %1335, %v1511_v50  }
 0x4e8   :  { %1336 = vset.pattern.permute.xlu1 %v1422_v44 }
 0x4e9   :  { %402 = vperm.xlu1 %1336, %v384_v1  }
 0x4ed   :  { %397 = vperm.xlu1 %1336, %v383_v3  }
 0x4f1   :  { %1337 = vset.pattern.permute.xlu1 %v1423_v63 }
 0x4f2   :  { %422 = vperm.xlu1 %1337, %v1517_v52  }
 0x4f6   :  { %1339 = vset.pattern.permute.xlu1 %v1424_v58 }
 0x556   :  { %v393_v5 = vpop.permute.xlu1 %392 }
 0x557   :  { %v388_v6 = vpop.permute.xlu0 %387  ;;  %v406_v10 = vmul.f32 %v393_v5, %v354_v30 }
 0x558   :  { %v405_v7 = vmul.f32 %v388_v6, %v353_v31  ;;  %v439_v31 = vld [vmem:[#allocation2 + $0x48] sm:$0xff] }
 0x55b   :  { %v411_v8 = vpop.permute.xlu1 %410 }
 0x55c   :  { %v425_v9 = vadd.f32 %v411_v8, %v405_v7 }
 0x55e   :  { %v429_v12 = vmul.f32 0.01, %v425_v9 }
 0x55f   :  { %v415_v11 = vpop.permute.xlu1 %414 }
 0x560   :  { %v426_v13 = vadd.f32 %v415_v11, %v406_v10  ;;  %v433_v16 = vmax.f32 %v425_v9, %v429_v12 }
 0x562   :  { %v430_v14 = vmul.f32 0.01, %v426_v13 }
 0x563   :  { %v419_v15 = vpop.permute.xlu1 %418 }
 0x564   :  { %v434_v17 = vmax.f32 %v426_v13, %v430_v14 }
 0x566   :  { %v1281_v18 = vpack.c.bf16 %v434_v17, %v433_v16  ;;  %v636_v16 = vld [vmem:[#allocation2 + $0x60] sm:$0xff] }
 0x567   :  { %1234 = vmatprep.mubr.msk.f32.mxu1 %vm36_vm0, %v636_v16 }
 0x568   :  { %v403_v19 = vpop.permute.xlu1 %402  ;;  %1282 = vmatprep.subr.bf16.mxu0 %v1281_v18 }
 0x569   :  { %1284 = vmatpush3.bf16.msra.mxu0 %v1281_v18  ;;  %v408_v23 = vmul.f32 %v403_v19, %v1529_v39 }
 0x56c   :  { %v398_v20 = vpop.permute.xlu1 %397 }
 0x56d   :  { %v407_v21 = vmul.f32 %v398_v20, %v1531_v40 }
 0x56f   :  { %v427_v22 = vadd.f32 %v419_v15, %v407_v21 }
 0x571   :  { %v423_v24 = vpop.permute.xlu1 %422  ;;  %v431_v25 = vmul.f32 0.01, %v427_v22 }
 0x572   :  { %v428_v26 = vadd.f32 %v423_v24, %v408_v23 }
 0x573   :  { %v435_v28 = vmax.f32 %v427_v22, %v431_v25 }
 0x574   :  { %v432_v27 = vmul.f32 0.01, %v428_v26 }
 0x576   :  { %v436_v29 = vmax.f32 %v428_v26, %v432_v27 }
 0x578   :  { %v1285_v30 = vpack.c.bf16 %v436_v29, %v435_v28 }
 0x57a   :  { %1286 = vmatprep.subr.bf16.mxu0 %v1285_v30 }
 0x57b   :  { %1288 = vmatpush3.bf16.msra.mxu0 %v1285_v30 }
 0x57e   :  { %1221 = vmatmul.mubr.msk.f32.vlgmr.msra.gmra.mrb[4].mxu0 %vm36_vm0, %v439_v31 }
 0x57f   :  { %1223 = vmatprep.mubr.msk.f32.mxu0 %vm36_vm0, %v440_v32 }
 0x582   :  { %1224 = vmatmul.mubr.msk.f32.gmra.mrb[6].mxu0 %vm36_vm0, %v441_v33 }
 0x651   :  { %v1222_v34 = vpop.f32.mrb[4].mxu0 }
 0x652   :  { %541 = vadd.xlane.f32.xlu0 %v1222_v34  ;;  %v520_v35 = vpop.f32.mrb[5].mxu0 }
 0x653   :  { %539 = vadd.xlane.f32.xlu1 %v520_v35 }
 0x655   :  { %v1225_v36 = vpop.f32.mrb[6].mxu0 }
 0x656   :  { %v530_v38 = vpop.f32.mrb[7].mxu0 }
 0x657   :  { %543 = vadd.xlane.f32.xlu0 %v530_v38 }
 0x65b   :  { %545 = vadd.xlane.f32.xlu0 %v1225_v36 }
 0x6df   :  { %v542_v39 = vpop.xlane.xlu0 %541 }
 0x6e0   :  { %v548_v40 = vmul.f32 0.0078125, %v542_v39  ;;  %v540_v41 = vpop.xlane.xlu1 %539 }
 0x6e1   :  { %v547_v43 = vmul.f32 0.0078125, %v540_v41 }
 0x6e2   :  { %v552_v44 = vsub.f32 %v1222_v34, %v548_v40 }
 0x6e3   :  { %v551_v45 = vsub.f32 %v520_v35, %v547_v43 }
 0x6e4   :  { %v544_v46 = vpop.xlane.xlu0 %543  ;;  %v556_v47 = vmul.f32 %v552_v44, %v552_v44 }
 0x6e5   :  { %v549_v48 = vmul.f32 0.0078125, %v544_v46  ;;  %v555_v49 = vmul.f32 %v551_v45, %v551_v45  ;;  %v638_v46 = vld [vmem:[#allocation2 + $0x70] sm:$0xff] }
 0x6e6   :  { %561 = vadd.xlane.f32.xlu0 %v556_v47  ;;  %v639_v47 = vld [vmem:[#allocation2 + $0x78] sm:$0xff] }
 0x6e7   :  { %v1551_v51 = vsub.f32 %v530_v38, %v549_v48  ;;  %559 = vadd.xlane.f32.xlu1 %v555_v49 }
 0x6e8   :  { %v546_v53 = vpop.xlane.xlu0 %545 }
 0x6e9   :  { %v550_v54 = vmul.f32 0.0078125, %v546_v53  ;;  %v557_v55 = vmul.f32 %v1551_v51, %v1551_v51 }
 0x6eb   :  { %v1555_v56 = vsub.f32 %v1225_v36, %v550_v54  ;;  %563 = vadd.xlane.f32.xlu1 %v557_v55  ;;  %v1426_v54 = vmov 8  }
 0x6ed   :  { %v558_v57 = vmul.f32 %v1555_v56, %v1555_v56 }
 0x6ef   :  { %565 = vadd.xlane.f32.xlu0 %v558_v57 }
 0x6fc   :  { %608 = vperm.xlu1 %1339, %v1497_v37  }
 0x700   :  { %612 = vperm.xlu1 %1339, %v1503_v42  }
 0x704   :  { %616 = vperm.xlu1 %1339, %v1511_v50  }
 0x708   :  { %1340 = vset.pattern.permute.xlu1 %v1425_v59 }
 0x773   :  { %v562_v60 = vpop.xlane.xlu0 %561 }
 0x774   :  { %v568_v61 = vmul.f32 0.0078125, %v562_v60  ;;  %v560_v62 = vpop.xlane.xlu1 %559 }
 0x775   :  { %v567_v63 = vmul.f32 0.0078125, %v560_v62 }
 0x776   :  { %v572_v0 = vadd.f32 1e-05, %v568_v61 }
 0x777   :  { %v571_v1 = vadd.f32 1e-05, %v567_v63 }
 0x778   :  { %1369 = vrsqrt.f32 %v572_v0  ;;  %v564_v2 = vpop.xlane.xlu1 %563 }
 0x779   :  { %1371 = vrsqrt.f32 %v571_v1  ;;  %v569_v3 = vmul.f32 0.0078125, %v564_v2 }
 0x77b   :  { %v573_v6 = vadd.f32 1e-05, %v569_v3 }
 0x77c   :  { %v566_v4 = vpop.xlane.xlu0 %565  ;;  %v609_v17 = vpop.permute.xlu1 %608 }
 0x77d   :  { %v570_v5 = vmul.f32 0.0078125, %v566_v4 }
 0x77f   :  { %v574_v7 = vadd.f32 1e-05, %v570_v5 }
 0x780   :  { %v613_v18 = vpop.permute.xlu1 %612 }
 0x781   :  { %1373 = vrsqrt.f32 %v574_v7  ;;  %v1427_v7 = vmov 3  }
 0x782   :  { %v1370_v8 = vpop.eup %1369  ;;  %1375 = vrsqrt.f32 %v573_v6 }
 0x783   :  { %v1372_v9 = vpop.eup %1371  ;;  %v580_v10 = vmul.f32 %v1370_v8, %v1503_v42 }
 0x784   :  { %v579_v11 = vmul.f32 %v1372_v9, %v1497_v37  ;;  %v617_v19 = vpop.permute.xlu1 %616 }
 0x785   :  { %590 = vperm.xlu0 %1338, %v580_v10  }
 0x786   :  { %585 = vperm.xlu1 %1340, %v579_v11  }
 0x789   :  { %1342 = vset.pattern.permute.xlu0 %v1427_v7 }
 0x78b   :  { %v1374_v12 = vpop.eup %1373 }
 0x78c   :  { %v582_v13 = vmul.f32 %v1374_v12, %v1517_v52  ;;  %v1376_v14 = vpop.eup %1375 }
 0x78d   :  { %v581_v15 = vmul.f32 %v1376_v14, %v1511_v50 }
 0x78e   :  { %600 = vperm.xlu1 %1340, %v582_v13  }
 0x792   :  { %595 = vperm.xlu1 %1340, %v581_v15  }
 0x796   :  { %1341 = vset.pattern.permute.xlu1 %v1424_v58 }
 0x797   :  { %620 = vperm.xlu1 %1341, %v1517_v52  }
 0x79b   :  { %1343 = vset.pattern.permute.xlu1 %v1426_v54 }
 0x804   :  { %v591_v20 = vpop.permute.xlu0 %590 }
 0x805   :  { %v604_v21 = vmul.f32 %v591_v20, %v552_v44  ;;  %v586_v22 = vpop.permute.xlu1 %585 }
 0x806   :  { %v603_v23 = vmul.f32 %v586_v22, %v551_v45  ;;  %v637_v45 = vld [vmem:[#allocation2 + $0x68] sm:$0xff] }
 0x807   :  { %v624_v24 = vadd.f32 %v613_v18, %v604_v21 }
 0x808   :  { %v623_v25 = vadd.f32 %v609_v17, %v603_v23 }
 0x809   :  { %v628_v26 = vmul.f32 0.01, %v624_v24 }
 0x80a   :  { %v627_v27 = vmul.f32 0.01, %v623_v25 }
 0x80b   :  { %v632_v28 = vmax.f32 %v624_v24, %v628_v26 }
 0x80c   :  { %v631_v29 = vmax.f32 %v623_v25, %v627_v27 }
 0x80d   :  { %v601_v30 = vpop.permute.xlu1 %600 }
 0x80e   :  { %v1289_v31 = vpack.c.bf16 %v632_v28, %v631_v29  ;;  %v606_v35 = vmul.f32 %v601_v30, %v1555_v56  ;;  %v834_v28 = vld [vmem:[#allocation2 + $0x80] sm:$0xff] }
 0x80f   :  { %1248 = vmatprep.mubr.msk.f32.mxu0 %vm36_vm0, %v834_v28 }
 0x810   :  { %1290 = vmatprep.subr.bf16.mxu1 %v1289_v31 }
 0x811   :  { %v596_v32 = vpop.permute.xlu1 %595  ;;  %1292 = vmatpush3.bf16.msra.mxu1 %v1289_v31 }
 0x812   :  { %v605_v33 = vmul.f32 %v596_v32, %v1551_v51 }
 0x814   :  { %v625_v34 = vadd.f32 %v617_v19, %v605_v33 }
 0x816   :  { %v621_v36 = vpop.permute.xlu1 %620  ;;  %v629_v38 = vmul.f32 0.01, %v625_v34 }
 0x817   :  { %v626_v39 = vadd.f32 %v621_v36, %v606_v35 }
 0x818   :  { %v633_v41 = vmax.f32 %v625_v34, %v629_v38 }
 0x819   :  { %v630_v40 = vmul.f32 0.01, %v626_v39 }
 0x81b   :  { %v634_v43 = vmax.f32 %v626_v39, %v630_v40 }
 0x81d   :  { %v1293_v44 = vpack.c.bf16 %v634_v43, %v633_v41 }
 0x81f   :  { %1294 = vmatprep.subr.bf16.mxu1 %v1293_v44 }
 0x820   :  { %1296 = vmatpush3.bf16.msra.mxu1 %v1293_v44 }
 0x823   :  { %1235 = vmatmul.mubr.msk.f32.vlgmr.msra.gmra.mrb[4].mxu1 %vm36_vm0, %v637_v45 }
 0x824   :  { %1237 = vmatprep.mubr.msk.f32.mxu1 %vm36_vm0, %v638_v46 }
 0x827   :  { %1238 = vmatmul.mubr.msk.f32.gmra.mrb[6].mxu1 %vm36_vm0, %v639_v47 }
 0x8f6   :  { %v1236_v48 = vpop.f32.mrb[4].mxu1 }
 0x8f7   :  { %739 = vadd.xlane.f32.xlu0 %v1236_v48  ;;  %v718_v49 = vpop.f32.mrb[5].mxu1 }
 0x8f8   :  { %737 = vadd.xlane.f32.xlu1 %v718_v49 }
 0x8fa   :  { %v1239_v51 = vpop.f32.mrb[6].mxu1 }
 0x8fb   :  { %743 = vadd.xlane.f32.xlu0 %v1239_v51  ;;  %v728_v53 = vpop.f32.mrb[7].mxu1 }
 0x8fc   :  { %741 = vadd.xlane.f32.xlu1 %v728_v53 }
 0x984   :  { %v740_v55 = vpop.xlane.xlu0 %739 }
 0x985   :  { %v746_v56 = vmul.f32 0.0078125, %v740_v55  ;;  %v738_v57 = vpop.xlane.xlu1 %737 }
 0x986   :  { %v745_v58 = vmul.f32 0.0078125, %v738_v57 }
 0x987   :  { %v750_v59 = vsub.f32 %v1236_v48, %v746_v56 }
 0x988   :  { %v749_v60 = vsub.f32 %v718_v49, %v745_v58  ;;  %v744_v61 = vpop.xlane.xlu0 %743 }
 0x989   :  { %v748_v62 = vmul.f32 0.0078125, %v744_v61  ;;  %v742_v63 = vpop.xlane.xlu1 %741  ;;  %v754_v0 = vmul.f32 %v750_v59, %v750_v59  ;;  %v837_v61 = vld [vmem:[#allocation2 + $0x98] sm:$0xff] }
 0x98a   :  { %v747_v1 = vmul.f32 0.0078125, %v742_v63  ;;  %v753_v2 = vmul.f32 %v749_v60, %v749_v60 }
 0x98b   :  { %v1573_v3 = vsub.f32 %v1239_v51, %v748_v62  ;;  %759 = vadd.xlane.f32.xlu0 %v754_v0 }
 0x98c   :  { %v751_v4 = vsub.f32 %v728_v53, %v747_v1  ;;  %757 = vadd.xlane.f32.xlu1 %v753_v2 }
 0x98d   :  { %v756_v5 = vmul.f32 %v1573_v3, %v1573_v3 }
 0x98e   :  { %v755_v6 = vmul.f32 %v751_v4, %v751_v4 }
 0x98f   :  { %763 = vadd.xlane.f32.xlu0 %v756_v5 }
 0x990   :  { %761 = vadd.xlane.f32.xlu1 %v755_v6 }
 0x9a1   :  { %806 = vperm.xlu1 %1343, %v1497_v37  }
 0x9a5   :  { %810 = vperm.xlu1 %1343, %v1503_v42  }
 0x9a9   :  { %814 = vperm.xlu1 %1343, %v1511_v50  }
 0x9ad   :  { %1344 = vset.pattern.permute.xlu1 %v1427_v7 }
 0xa18   :  { %v760_v8 = vpop.xlane.xlu0 %759 }
 0xa19   :  { %v766_v9 = vmul.f32 0.0078125, %v760_v8  ;;  %v758_v10 = vpop.xlane.xlu1 %757 }
 0xa1a   :  { %v765_v11 = vmul.f32 0.0078125, %v758_v10 }
 0xa1b   :  { %v770_v12 = vadd.f32 1e-05, %v766_v9 }
 0xa1c   :  { %v769_v13 = vadd.f32 1e-05, %v765_v11  ;;  %v764_v14 = vpop.xlane.xlu0 %763 }
 0xa1d   :  { %1377 = vrsqrt.f32 %v770_v12  ;;  %v768_v15 = vmul.f32 0.0078125, %v764_v14  ;;  %v762_v16 = vpop.xlane.xlu1 %761 }
 0xa1e   :  { %1379 = vrsqrt.f32 %v769_v13  ;;  %v767_v17 = vmul.f32 0.0078125, %v762_v16 }
 0xa1f   :  { %v772_v18 = vadd.f32 1e-05, %v768_v15 }
 0xa20   :  { %v771_v19 = vadd.f32 1e-05, %v767_v17 }
 0xa21   :  { %1381 = vrsqrt.f32 %v772_v18  ;;  %v807_v29 = vpop.permute.xlu1 %806  ;;  %v1428_v18 = vmov 4  }
 0xa22   :  { %1383 = vrsqrt.f32 %v771_v19 }
 0xa25   :  { %v811_v30 = vpop.permute.xlu1 %810 }
 0xa27   :  { %v1378_v20 = vpop.eup %1377 }
 0xa28   :  { %v1380_v21 = vpop.eup %1379  ;;  %v778_v22 = vmul.f32 %v1378_v20, %v1503_v42 }
 0xa29   :  { %v777_v23 = vmul.f32 %v1380_v21, %v1497_v37  ;;  %v815_v31 = vpop.permute.xlu1 %814 }
 0xa2a   :  { %788 = vperm.xlu0 %1342, %v778_v22  }
 0xa2b   :  { %v1382_v24 = vpop.eup %1381  ;;  %783 = vperm.xlu1 %1344, %v777_v23  }
 0xa2c   :  { %v780_v25 = vmul.f32 %v1382_v24, %v1517_v52  ;;  %v1384_v26 = vpop.eup %1383 }
 0xa2d   :  { %v779_v27 = vmul.f32 %v1384_v26, %v1511_v50 }
 0xa2e   :  { %1346 = vset.pattern.permute.xlu0 %v1428_v18 }
 0xa2f   :  { %798 = vperm.xlu1 %1344, %v780_v25  }
 0xa33   :  { %793 = vperm.xlu1 %1344, %v779_v27  }
 0xa37   :  { %1345 = vset.pattern.permute.xlu1 %v1426_v54 }
 0xa38   :  { %818 = vperm.xlu1 %1345, %v1517_v52  }
 0xa3c   :  { %1347 = vset.pattern.permute.xlu1 %v1428_v18 }
 0xaa9   :  { %v789_v32 = vpop.permute.xlu0 %788 }
 0xaaa   :  { %v802_v33 = vmul.f32 %v789_v32, %v750_v59  ;;  %v784_v34 = vpop.permute.xlu1 %783  ;;  %v835_v59 = vld [vmem:[#allocation2 + $0x88] sm:$0xff] }
 0xaab   :  { %v801_v35 = vmul.f32 %v784_v34, %v749_v60  ;;  %v836_v60 = vld [vmem:[#allocation2 + $0x90] sm:$0xff] }
 0xaac   :  { %v822_v36 = vadd.f32 %v811_v30, %v802_v33 }
 0xaad   :  { %v821_v38 = vadd.f32 %v807_v29, %v801_v35  ;;  %v1429_v35 = vmov 9  }
 0xaae   :  { %v826_v39 = vmul.f32 0.01, %v822_v36  ;;  %v799_v40 = vpop.permute.xlu1 %798 }
 0xaaf   :  { %v825_v41 = vmul.f32 0.01, %v821_v38  ;;  %v804_v49 = vmul.f32 %v799_v40, %v1573_v3 }
 0xab0   :  { %v830_v43 = vmax.f32 %v822_v36, %v826_v39  ;;  %v1430_v39 = vmov 0.0|0.0  }
 0xab1   :  { %v829_v44 = vmax.f32 %v821_v38, %v825_v41  ;;  %1305 = vmatprep.subr.bf16.mxu1 %v1430_v39 }
 0xab2   :  { %v794_v45 = vpop.permute.xlu1 %793 }
 0xab3   :  { %v803_v46 = vmul.f32 %v794_v45, %v751_v4  ;;  %v1297_v47 = vpack.c.bf16 %v830_v43, %v829_v44  ;;  %v1433_v43 = vmov 10  }
 0xab5   :  { %v823_v48 = vadd.f32 %v815_v31, %v803_v46  ;;  %1298 = vmatprep.subr.bf16.mxu0 %v1297_v47 }
 0xab6   :  { %1300 = vmatpush3.bf16.msra.mxu0 %v1297_v47 }
 0xab7   :  { %v819_v51 = vpop.permute.xlu1 %818  ;;  %v827_v53 = vmul.f32 0.01, %v823_v48 }
 0xab8   :  { %v824_v54 = vadd.f32 %v819_v51, %v804_v49 }
 0xab9   :  { %v831_v56 = vmax.f32 %v823_v48, %v827_v53 }
 0xaba   :  { %v828_v55 = vmul.f32 0.01, %v824_v54 }
 0xabc   :  { %v832_v57 = vmax.f32 %v824_v54, %v828_v55 }
 0xabe   :  { %v1301_v58 = vpack.c.bf16 %v832_v57, %v831_v56 }
 0xac0   :  { %1302 = vmatprep.subr.bf16.mxu0 %v1301_v58 }
 0xac1   :  { %1304 = vmatpush3.bf16.msra.mxu0 %v1301_v58 }
 0xac4   :  { %1249 = vmatmul.mubr.msk.f32.vlgmr.msra.gmra.mrb[8].mxu0 %vm36_vm0, %v835_v59 }
 0xac5   :  { %1251 = vmatprep.mubr.msk.f32.mxu0 %vm36_vm0, %v836_v60 }
 0xac8   :  { %1252 = vmatmul.mubr.msk.f32.gmra.mrb[10].mxu0 %vm36_vm0, %v837_v61 }
 0xb97   :  { %v1250_v62 = vpop.f32.mrb[8].mxu0 }
 0xb98   :  { %937 = vadd.xlane.f32.xlu0 %v1250_v62  ;;  %v916_v63 = vpop.f32.mrb[9].mxu0 }
 0xb99   :  { %935 = vadd.xlane.f32.xlu1 %v916_v63 }
 0xb9b   :  { %v1253_v0 = vpop.f32.mrb[10].mxu0 }
 0xb9c   :  { %v926_v1 = vpop.f32.mrb[11].mxu0 }
 0xb9d   :  { %941 = vadd.xlane.f32.xlu1 %v1253_v0  ;;  %939 = vadd.xlane.f32.xlu0 %v926_v1 }
 0xc25   :  { %v938_v2 = vpop.xlane.xlu0 %937 }
 0xc26   :  { %v944_v3 = vmul.f32 0.0078125, %v938_v2  ;;  %v936_v4 = vpop.xlane.xlu1 %935 }
 0xc27   :  { %v943_v5 = vmul.f32 0.0078125, %v936_v4 }
 0xc28   :  { %v1590_v6 = vsub.f32 %v1250_v62, %v944_v3 }
 0xc29   :  { %v1592_v7 = vsub.f32 %v916_v63, %v943_v5 }
 0xc2a   :  { %v942_v8 = vpop.xlane.xlu1 %941  ;;  %v940_v9 = vpop.xlane.xlu0 %939  ;;  %v952_v10 = vmul.f32 %v1590_v6, %v1590_v6 }
 0xc2b   :  { %v946_v11 = vmul.f32 0.0078125, %v942_v8  ;;  %v945_v12 = vmul.f32 0.0078125, %v940_v9  ;;  %v951_v13 = vmul.f32 %v1592_v7, %v1592_v7 }
 0xc2c   :  { %957 = vadd.xlane.f32.xlu1 %v952_v10 }
 0xc2d   :  { %v1598_v14 = vsub.f32 %v1253_v0, %v946_v11  ;;  %v1600_v15 = vsub.f32 %v926_v1, %v945_v12  ;;  %955 = vadd.xlane.f32.xlu0 %v951_v13 }
 0xc2f   :  { %v954_v16 = vmul.f32 %v1598_v14, %v1598_v14  ;;  %v953_v17 = vmul.f32 %v1600_v15, %v1600_v15 }
 0xc31   :  { %961 = vadd.xlane.f32.xlu1 %v954_v16  ;;  %959 = vadd.xlane.f32.xlu0 %v953_v17 }
 0xcb9   :  { %v958_v19 = vpop.xlane.xlu1 %957 }
 0xcba   :  { %v964_v20 = vmul.f32 0.0078125, %v958_v19  ;;  %v956_v21 = vpop.xlane.xlu0 %955 }
 0xcbb   :  { %v963_v22 = vmul.f32 0.0078125, %v956_v21 }
 0xcbc   :  { %v968_v23 = vadd.f32 1e-05, %v964_v20 }
 0xcbd   :  { %v967_v24 = vadd.f32 1e-05, %v963_v22 }
 0xcbe   :  { %1385 = vrsqrt.f32 %v968_v23  ;;  %v962_v25 = vpop.xlane.xlu1 %961  ;;  %v960_v27 = vpop.xlane.xlu0 %959 }
 0xcbf   :  { %1387 = vrsqrt.f32 %v967_v24  ;;  %v966_v26 = vmul.f32 0.0078125, %v962_v25  ;;  %v965_v32 = vmul.f32 0.0078125, %v960_v27 }
 0xcc1   :  { %v970_v31 = vadd.f32 1e-05, %v966_v26  ;;  %v969_v34 = vadd.f32 1e-05, %v965_v32 }
 0xcc3   :  { %1389 = vrsqrt.f32 %v970_v31 }
 0xcc4   :  { %1391 = vrsqrt.f32 %v969_v34 }
 0xcc8   :  { %v1386_v28 = vpop.eup %1385 }
 0xcc9   :  { %v1388_v29 = vpop.eup %1387  ;;  %v976_v30 = vmul.f32 %v1386_v28, %v1503_v42 }
 0xcca   :  { %v975_v33 = vmul.f32 %v1388_v29, %v1497_v37 }
 0xccb   :  { %986 = vperm.xlu1 %1347, %v976_v30  }
 0xccc   :  { %981 = vperm.xlu0 %1346, %v975_v33  }
 0xccd   :  { %v1390_v36 = vpop.eup %1389 }
 0xcce   :  { %v978_v38 = vmul.f32 %v1390_v36, %v1517_v52  ;;  %v1392_v40 = vpop.eup %1391 }
 0xccf   :  { %1348 = vset.pattern.permute.xlu1 %v1429_v35  ;;  %v977_v41 = vmul.f32 %v1392_v40, %v1511_v50 }
 0xcd0   :  { %1004 = vperm.xlu1 %1348, %v1497_v37   ;;  %v1432_v37 = vmov 0.0   ;;  %1352 = vset.pattern.permute.xlu0 %v1433_v43 }
 0xcd1   :  { %1262 = vmatprep.mubr.msk.f32.mxu1 %vm1431_vm1, %v1432_v37 }
 0xcd4   :  { %1008 = vperm.xlu1 %1348, %v1503_v42   ;;  %v1033_v42 = vld [vmem:[%s1627_s2] sm:$0x1] }
 0xcd8   :  { %1012 = vperm.xlu1 %1348, %v1511_v50  }
 0xcdc   :  { %1349 = vset.pattern.permute.xlu1 %v1428_v18 }
 0xcdd   :  { %996 = vperm.xlu1 %1349, %v978_v38  }
 0xce1   :  { %991 = vperm.xlu1 %1349, %v977_v41  }
 0xce5   :  { %1350 = vset.pattern.permute.xlu1 %v1429_v35 }
 0xce6   :  { %1016 = vperm.xlu1 %1350, %v1517_v52  }
 0xcea   :  { %1351 = vset.pattern.permute.xlu1 %v1433_v43 }
 0xceb   :  { %1036 = vperm.xlu1 %1351, %v1033_v42  }
 0xd4a   :  { %v987_v44 = vpop.permute.xlu1 %986 }
 0xd4b   :  { %v982_v45 = vpop.permute.xlu0 %981  ;;  %v1000_v48 = vmul.f32 %v987_v44, %v1590_v6  ;;  %v1032_v6 = vld [vmem:[#allocation2 + $0xa0] sm:$0xff] }
 0xd4c   :  { %v999_v46 = vmul.f32 %v982_v45, %v1592_v7 }
 0xd4f   :  { %v1005_v50 = vpop.permute.xlu1 %1004 }
 0xd50   :  { %v1019_v47 = vadd.f32 %v1005_v50, %v999_v46 }
 0xd52   :  { %v1023_v49 = vmul.f32 0.01, %v1019_v47 }
 0xd53   :  { %v1009_v52 = vpop.permute.xlu1 %1008 }
 0xd54   :  { %v1020_v51 = vadd.f32 %v1009_v52, %v1000_v48  ;;  %v1027_v55 = vmax.f32 %v1019_v47, %v1023_v49 }
 0xd56   :  { %v1024_v53 = vmul.f32 0.01, %v1020_v51 }
 0xd57   :  { %v1013_v54 = vpop.permute.xlu1 %1012 }
 0xd58   :  { %v1028_v56 = vmax.f32 %v1020_v51, %v1024_v53 }
 0xd5a   :  { %v1306_v57 = vpack.c.bf16 %v1028_v56, %v1027_v55 }
 0xd5c   :  { %v997_v58 = vpop.permute.xlu1 %996  ;;  %1307 = vmatpush3.bf16.msra.mxu1 %v1306_v57 }
 0xd5d   :  { %1308 = vmatprep.subr.bf16.mxu1 %v1430_v39  ;;  %v1002_v62 = vmul.f32 %v997_v58, %v1598_v14 }
 0xd60   :  { %v992_v59 = vpop.permute.xlu1 %991 }
 0xd61   :  { %v1001_v60 = vmul.f32 %v992_v59, %v1600_v15 }
 0xd63   :  { %v1021_v61 = vadd.f32 %v1013_v54, %v1001_v60 }
 0xd65   :  { %v1017_v63 = vpop.permute.xlu1 %1016  ;;  %v1025_v0 = vmul.f32 0.01, %v1021_v61 }
 0xd66   :  { %v1022_v1 = vadd.f32 %v1017_v63, %v1002_v62 }
 0xd67   :  { %v1029_v3 = vmax.f32 %v1021_v61, %v1025_v0 }
 0xd68   :  { %v1026_v2 = vmul.f32 0.01, %v1022_v1 }
 0xd6a   :  { %v1030_v4 = vmax.f32 %v1022_v1, %v1026_v2  ;;  %v1037_v7 = vpop.permute.xlu1 %1036 }
 0xd6c   :  { %v1309_v5 = vpack.c.bf16 %v1030_v4, %v1029_v3 }
 0xd6e   :  { %1310 = vmatpush3.bf16.msra.mxu1 %v1309_v5 }
 0xd71   :  { %1263 = vmatmul.mubr.msk.f32.vlgmr.msra.gmra.mrb[8].mxu1 %vm36_vm0, %v1032_v6 }
 0xe44   :  { %v1108_v8 = vpop.f32.mrb[8].mxu1 }
 0xe45   :  { %v1109_v9 = vadd.f32 %v1108_v8, %v1037_v7  ;;  %v1264_v10 = vpop.f32.mrb[9].mxu1 }
 0xe47   :  { %1112 = vst [vmem:[%s1628_s3] sm:$0x1] %v1109_v9 }
 0xe48   :  { %1117 = vsyncpa [#allocation3], 1 }

</bundles_post_ra>
